<compile_context>
chip_gen: v6e
topology: v6e:2x2x1
jax: 0.10.0
libtpu: 0.0.40
codegen_flags: <defaults>
</compile_context>

<pallas_src>
import functools

import jax
import jax.numpy as jnp
from jax import lax
from jax.experimental import pallas as pl
from jax.experimental.pallas import tpu as pltpu


def _split_batch(B):
    """Split batch into (num_grid_steps, batch_block). 2-way when possible so a
    v7x megacore can shard the parallel axis; otherwise whole batch in one step."""
    if B >= 2 and B % 2 == 0:
        return 2, B // 2
    return 1, B


# ----------------------------------------------------------------------------
# Kernel 1: covariance (+ trace regularization) fused with the first bilinear.
#   cov_b = xc_b xc_b^T / F + 0.01 * (||xc_b||_F^2 / F)      (added to every elem)
#   out_b = W1^T cov_b W1
# ----------------------------------------------------------------------------
def cov_bimap_kernel(x_ref, wt_ref, o_ref, *, inv_f):
    x = x_ref[...]                                   # (bb, F, T)
    wt = wt_ref[...]                                 # (M, F)  == W^T
    mean = jnp.mean(x, axis=1, keepdims=True)        # mean over the 32-axis
    xc = x - mean
    scale = jnp.float32(inv_f)
    for b in range(x.shape[0]):                      # bb is small & static
        xc_b = xc[b]                                 # (F, T)
        cov = lax.dot_general(xc_b, xc_b, (((1,), (1,)), ((), ())),
                              preferred_element_type=jnp.float32) * scale
        tr = jnp.sum(xc_b * xc_b) * scale            # trace(cov) = ||xc||_F^2 / F
        cov = cov + jnp.float32(0.01) * tr           # added to EVERY element
        tmp = jnp.dot(wt, cov, preferred_element_type=jnp.float32)       # W^T S
        o_ref[b] = lax.dot_general(tmp, wt, (((1,), (1,)), ((), ())),
                                   preferred_element_type=jnp.float32)   # W^T S W


def cov_bimap(x3, wt):
    B, F, T = x3.shape
    M = wt.shape[0]
    nb, bb = _split_batch(B)
    return pl.pallas_call(
        functools.partial(cov_bimap_kernel, inv_f=1.0 / F),
        out_shape=jax.ShapeDtypeStruct((B, M, M), jnp.float32),
        grid=(nb,),
        in_specs=[pl.BlockSpec((bb, F, T), lambda g: (g, 0, 0)),
                  pl.BlockSpec((M, F), lambda g: (0, 0))],
        out_specs=pl.BlockSpec((bb, M, M), lambda g: (g, 0, 0)),
        compiler_params=pltpu.CompilerParams(dimension_semantics=("parallel",)),
    )(x3, wt)


# ----------------------------------------------------------------------------
# Kernel 2: ReEig reconstruction fused with the NEXT bilinear map.
#   W^T (U diag(max(s,eps)) U^T) W = Q diag(s') Q^T   with Q = W^T U
# ----------------------------------------------------------------------------
def reeig_bimap_kernel(u_ref, s_ref, wt_ref, o_ref, *, eps):
    wt = wt_ref[...]                                 # (M, N) == W^T
    for b in range(u_ref.shape[0]):
        u = u_ref[b]                                 # (N, N) eigenvectors (cols)
        s = jnp.maximum(s_ref[b], jnp.float32(eps))  # (1, N) clamped eigenvalues
        q = jnp.dot(wt, u, preferred_element_type=jnp.float32)            # (M, N)
        o_ref[b] = lax.dot_general(q * s, q, (((1,), (1,)), ((), ())),
                                   preferred_element_type=jnp.float32)    # (M, M)


def reeig_bimap(evecs, evals, wt, eps=1e-4):
    B, N, _ = evecs.shape
    M = wt.shape[0]
    nb, bb = _split_batch(B)
    return pl.pallas_call(
        functools.partial(reeig_bimap_kernel, eps=eps),
        out_shape=jax.ShapeDtypeStruct((B, M, M), jnp.float32),
        grid=(nb,),
        in_specs=[pl.BlockSpec((bb, N, N), lambda g: (g, 0, 0)),
                  pl.BlockSpec((bb, 1, N), lambda g: (g, 0, 0)),
                  pl.BlockSpec((M, N), lambda g: (0, 0))],
        out_specs=pl.BlockSpec((bb, M, M), lambda g: (g, 0, 0)),
        compiler_params=pltpu.CompilerParams(dimension_semantics=("parallel",)),
    )(evecs.astype(jnp.float32),
      evals.astype(jnp.float32).reshape(B, 1, N),
      wt)


# ----------------------------------------------------------------------------
# Kernel 3: final ReEig reconstruction fused with the FC layer.
#   M_b = U diag(max(s,eps)) U^T ;  logits_b = rowmajor_flatten(M_b) @ W_fc
#   (flatten done as a sum of 4 row-matmuls to keep everything as plain 2D dots)
# ----------------------------------------------------------------------------
def reeig_fc_kernel(u_ref, s_ref, wfc_ref, o_ref, *, eps):
    wfc = wfc_ref[...]                               # (N*N, C)
    n = u_ref.shape[1]
    c = wfc.shape[1]
    rows = []
    for b in range(u_ref.shape[0]):
        u = u_ref[b]                                 # (N, N)
        s = jnp.maximum(s_ref[b], jnp.float32(eps))  # (1, N)
        us = u * s                                   # scale eigenvector columns
        m = lax.dot_general(us, u, (((1,), (1,)), ((), ())),
                            preferred_element_type=jnp.float32)   # U diag(s') U^T
        acc = jnp.zeros((1, c), jnp.float32)
        for i in range(n):                           # row-major flatten @ W_fc
            acc = acc + jnp.dot(m[i:i + 1, :], wfc[n * i:n * (i + 1), :],
                                preferred_element_type=jnp.float32)
        rows.append(acc)
    o_ref[...] = rows[0] if len(rows) == 1 else jnp.concatenate(rows, axis=0)


def reeig_fc(evecs, evals, w_fc, eps=1e-4):
    B, N, _ = evecs.shape
    C = w_fc.shape[1]
    nb, bb = _split_batch(B)
    return pl.pallas_call(
        functools.partial(reeig_fc_kernel, eps=eps),
        out_shape=jax.ShapeDtypeStruct((B, C), jnp.float32),
        grid=(nb,),
        in_specs=[pl.BlockSpec((bb, N, N), lambda g: (g, 0, 0)),
                  pl.BlockSpec((bb, 1, N), lambda g: (g, 0, 0)),
                  pl.BlockSpec((N * N, C), lambda g: (0, 0))],
        out_specs=pl.BlockSpec((bb, C), lambda g: (g, 0)),
        compiler_params=pltpu.CompilerParams(dimension_semantics=("parallel",)),
    )(evecs.astype(jnp.float32),
      evals.astype(jnp.float32).reshape(B, 1, N),
      w_fc.astype(jnp.float32))


# ----------------------------------------------------------------------------
# Full SPDNetwork forward
# ----------------------------------------------------------------------------
def spdnet_forward(x, w1, w2, w3, w_fc):
    x3 = x[:, 0, :, :].astype(jnp.float32)           # squeeze channel -> [B, 32, T]
    w1t = jnp.transpose(w1).astype(jnp.float32)      # (16, 32)
    w2t = jnp.transpose(w2).astype(jnp.float32)      # (8, 16)
    w3t = jnp.transpose(w3).astype(jnp.float32)      # (4, 8)

    res1 = cov_bimap(x3, w1t)                        # [B,16,16] = W1^T (cov+reg) W1
    # TODO(synk): util.rec_mat_v2 (SPDNet ReEig) needs a symmetric eigen-
    # decomposition; eigh has no Pallas TPU equivalent (and dominates wall clock),
    # so it stays in plain JAX/XLA. The clamp + reconstruction is fused into the
    # following Pallas kernel.
    e1, u1 = jnp.linalg.eigh(res1)
    res2 = reeig_bimap(u1, e1, w2t)                  # fused ReEig1 + BiMap2 -> [B,8,8]
    e2, u2 = jnp.linalg.eigh(res2)
    res3 = reeig_bimap(u2, e2, w3t)                  # fused ReEig2 + BiMap3 -> [B,4,4]
    e3, u3 = jnp.linalg.eigh(res3)
    logits = reeig_fc(u3, e3, w_fc)                  # fused ReEig3 + FC -> [B,10]
    # torch.matmul([B,16], [1,16,10]) broadcasts the batch dim -> [1, B, 10]
    return logits[None, :, :]


if __name__ == "__main__":
    key = jax.random.PRNGKey(0)
    k1, k2, k3, k4, kx = jax.random.split(key, 5)

    # weight_i = U from SVD of randn(n_in, n_out) (orthonormal columns),
    # matching the PyTorch __init__ shapes (32->16, 16->8, 8->4).
    w1 = jnp.linalg.svd(jax.random.normal(k1, (32, 16), jnp.float32),
                        full_matrices=False)[0]
    w2 = jnp.linalg.svd(jax.random.normal(k2, (16, 8), jnp.float32),
                        full_matrices=False)[0]
    w3 = jnp.linalg.svd(jax.random.normal(k3, (8, 4), jnp.float32),
                        full_matrices=False)[0]
    w_fc = jax.random.normal(k4, (16, 10), jnp.float32)

    # Input: [B, 1, 32, T]  (dim-2 must be 32, as hard-coded in Covariance)
    x = jax.random.normal(kx, (2, 1, 32, 16), jnp.float32)

    out = spdnet_forward(x, w1, w2, w3, w_fc)
    jax.block_until_ready(out)
    assert out.shape == (1, 2, 10), out.shape
    print("KERNEL_OK")
</pallas_src>

<mosaic_0001>
module attributes {stable_mosaic.version = 11 : i64} {
  func.func @cov_bimap_kernel(%arg0: i32, %arg1: memref<1x32x16xf32, #tpu.memory_space<vmem>>, %arg2: memref<16x32xf32, #tpu.memory_space<vmem>>, %arg3: memref<1x16x16xf32, #tpu.memory_space<vmem>>) attributes {dimension_semantics = [#tpu.dimension_semantics<parallel>], iteration_bounds = array<i64: 2>, scalar_prefetch = 0 : i64, scratch_operands = 0 : i64, tpu.core_type = #tpu.core_type<tc>, window_params = [{transform_indices = @transform_0, window_bounds = array<i64: 1, 32, 16>}, {pipeline_mode = #tpu.pipeline_mode<synchronous>, transform_indices = @transform_1, window_bounds = array<i64: 16, 32>}, {transform_indices = @transform_2, window_bounds = array<i64: 1, 16, 16>}]} {
    %c0 = arith.constant 0 : index
    %c0_0 = arith.constant 0 : index
    %c0_1 = arith.constant 0 : index
    %0 = vector.load %arg1[%c0, %c0_0, %c0_1] : memref<1x32x16xf32, #tpu.memory_space<vmem>>, vector<1x32x16xf32>
    %c0_2 = arith.constant 0 : index
    %c0_3 = arith.constant 0 : index
    %1 = vector.load %arg2[%c0_2, %c0_3] : memref<16x32xf32, #tpu.memory_space<vmem>>, vector<16x32xf32>
    %cst = arith.constant dense<0.000000e+00> : vector<1x16xf32>
    %2 = vector.multi_reduction <add>, %0, %cst [1] : vector<1x32x16xf32> to vector<1x16xf32>
    %3 = vector.shape_cast %2 : vector<1x16xf32> to vector<1x1x16xf32>
    %cst_4 = arith.constant 3.200000e+01 : f32
    %4 = vector.broadcast %cst_4 : f32 to vector<1x1x16xf32>
    %5 = arith.divf %3, %4 : vector<1x1x16xf32>
    %6 = vector.broadcast %5 : vector<1x1x16xf32> to vector<1x32x16xf32>
    %7 = arith.subf %0, %6 : vector<1x32x16xf32>
    %8 = vector.shape_cast %7 : vector<1x32x16xf32> to vector<32x16xf32>
    %cst_5 = arith.constant dense<0.000000e+00> : vector<32x32xf32>
    %9 = tpu.matmul %8, %8, %cst_5 {dimension_numbers = #tpu.dot_dimension_numbers<[1], [1], [0], [0], [0, 0, 1, 0], [], []>} : vector<32x16xf32>, vector<32x16xf32>, vector<32x32xf32> -> vector<32x32xf32>
    %cst_6 = arith.constant 3.125000e-02 : f32
    %10 = vector.broadcast %cst_6 : f32 to vector<32x32xf32>
    %11 = arith.mulf %9, %10 : vector<32x32xf32>
    %12 = arith.mulf %8, %8 : vector<32x16xf32>
    %13 = vector.shape_cast %12 : vector<32x16xf32> to vector<1x32x16xf32>
    %cst_7 = arith.constant dense<0.000000e+00> : vector<1xf32>
    %14 = vector.multi_reduction <add>, %13, %cst_7 [1, 2] : vector<1x32x16xf32> to vector<1xf32>
    %15 = vector.shape_cast %14 : vector<1xf32> to vector<1x1x1xf32>
    %16 = vector.extract %15[0, 0, 0] : f32 from vector<1x1x1xf32>
    %cst_8 = arith.constant 3.125000e-02 : f32
    %17 = arith.mulf %16, %cst_8 : f32
    %cst_9 = arith.constant 0.00999999977 : f32
    %18 = arith.mulf %cst_9, %17 : f32
    %19 = vector.broadcast %18 : f32 to vector<32x32xf32>
    %20 = arith.addf %11, %19 : vector<32x32xf32>
    %cst_10 = arith.constant dense<0.000000e+00> : vector<16x32xf32>
    %21 = tpu.matmul %1, %20, %cst_10 {dimension_numbers = #tpu.dot_dimension_numbers<[1], [0], [0], [1], [0, 0, 1, 1], [], []>} : vector<16x32xf32>, vector<32x32xf32>, vector<16x32xf32> -> vector<16x32xf32>
    %cst_11 = arith.constant dense<0.000000e+00> : vector<16x16xf32>
    %22 = tpu.matmul %21, %1, %cst_11 {dimension_numbers = #tpu.dot_dimension_numbers<[1], [1], [0], [0], [0, 0, 1, 0], [], []>} : vector<16x32xf32>, vector<16x32xf32>, vector<16x16xf32> -> vector<16x16xf32>
    %c0_12 = arith.constant 0 : index
    %c0_13 = arith.constant 0 : index
    %c0_14 = arith.constant 0 : index
    %23 = vector.load %arg3[%c0_12, %c0_13, %c0_14] : memref<1x16x16xf32, #tpu.memory_space<vmem>>, vector<1x16x16xf32>
    %24 = vector.shape_cast %23 : vector<1x16x16xf32> to vector<16x16xf32>
    %25 = vector.shape_cast %22 : vector<16x16xf32> to vector<1x16x16xf32>
    tpu.vector_store %arg3[%c0_12, %c0_13, %c0_14], %25 {strides = array<i32>} : memref<1x16x16xf32, #tpu.memory_space<vmem>>, vector<1x16x16xf32>,
    return
  }
  func.func @transform_0(%arg0: i32) -> (i32, i32, i32) {
    %c0_i32 = arith.constant 0 : i32
    %c0_i32_0 = arith.constant 0 : i32
    %c0_i32_1 = arith.constant 0 : i32
    return %arg0, %c0_i32, %c0_i32_0 : i32, i32, i32
  }
  func.func @transform_1(%arg0: i32) -> (i32, i32) {
    %c0_i32 = arith.constant 0 : i32
    %c0_i32_0 = arith.constant 0 : i32
    %c0_i32_1 = arith.constant 0 : i32
    return %c0_i32, %c0_i32_0 : i32, i32
  }
  func.func @transform_2(%arg0: i32) -> (i32, i32, i32) {
    %c0_i32 = arith.constant 0 : i32
    %c0_i32_0 = arith.constant 0 : i32
    %c0_i32_1 = arith.constant 0 : i32
    return %arg0, %c0_i32, %c0_i32_0 : i32, i32, i32
  }
}

</mosaic_0001>

<bundles_post_ra>
// kernel: tpu_custom_call.1
= control target key start
LH: loop header
LB: loop body
LE: loop exit
PB: predicated region body
PF: predicated region fallthrough
CT: control target
= control target key end

     0   :  { %7 = vsyncpa [#allocation3], 0  ;;  %s876_s0 = inlined_call_operand.vmem [shape: f32[2,32,16], index: 0, kind: input, shape index: {}]   ;;  %s877_s1 = inlined_call_operand.vmem [shape: f32[16,32], index: 1, kind: input, shape index: {}]   ;;  %s878_s2 = inlined_call_operand.hbm [shape: f32[2,16,16], index: 2, kind: output, shape index: {}]  }
   0x1   :  { %9 = vsyncpa [#allocation3 + $0x1], 0  ;;  %s738_s9 = smov 0   ;;  %s740_s10 = smov 0  }
   0x2   :  { %s742_s11 = smov 0   ;;  %s744_s12 = smov 0  }
   0x3 LB: > { %s759_s13 = sadd.s32 4294967295, %s718_s12   ;;  %s537_s14 = sadd.s32 4294967294, %s718_s12   ;;  %s718_s12 = sphi %s744_s12, %s884_s12   ;;  %s714_s11 = sphi %s742_s11, %s883_s11   ;;  %s710_s10 = sphi %s740_s10, %s882_s10   ;;  %s706_s9 = sphi %s738_s9, %s881_s9  }
   0x4   : > { %s763_s15 = sadd.s32 1, %s718_s12   ;;  %s69_s16 = sadd.s32 1, %s714_s11 }
   0x5   : > { %s66_s17 = ssub.s32 %s718_s12, %s763_s15  ;;  %p79_p0 = scmp.ne.s32.totalorder %s714_s11, %s710_s10 }
   0x6   : > { %p67_p1 = scmp.eq.s32.totalorder %s66_s17, 0  ;;  %p80_p2 = scmp.eq.s32.totalorder %s759_s13, 1 }
   0x7   : > { %p85_p3 = scmp.ne.s32.totalorder %s710_s10, %s706_s9  ;;  %p86_p4 = scmp.eq.s32.totalorder %s537_s14, 1 }
   0x8   : > { %s774_s18 = scalar_select %p67_p1, %s714_s11, %s69_s16  }
   0x9   : > { %p776_p5 = por %p80_p2, %p79_p0  ;;  %p780_p6 = por %p86_p4, %p85_p3 }
   0xa   : > { %p540_p7 = scmp.ge.s32.totalorder %s718_s12, 1  ;;  %p115_p8 = scmp.lt.s32.totalorder %s718_s12, 3 }
   0xc   : > { %p116_p9 = pnand %p540_p7, %p115_p8 }
   0xd   : > { %p137_p10 = scmp.lt.s32.totalorder (!%p116_p9), %s759_s13, 1  ;;  %s134_s5 = sand.u32 (!%p116_p9), 1, %s710_s10  }
   0xe   : > { %119 = sbr.rel (%p116_p9) target bundleno = 677 (0x2a5), region = 28  ;;  %s541_s6 = sshll.u32 (!%p116_p9), %s134_s5, 4 }
   0xf   : > { %s136_s7 = scalar_lea.vmem (!%p116_p9), [#allocation2], %s541_s6  ;;  %s564_s14 = sshll.u32 (!%p116_p9), %s759_s13, 8 }
  0x10   : > { %s475_s8 = sshll.u32 (!%p116_p9), %s136_s7, 4  ;;  %s827_s8 = int_to_ptr.vmem [resolvable:$true] %s475_s8 }
  0x11   : > { %s658_s23 = scalar_lea.vmem (!%p116_p9), %s827_s8, 256 }
  0x12   : > { %p659_p11 = scmp.ne.s32.totalorder (!%p116_p9), %s827_s8, %s658_s23 }
  0x13   : > { %s138_s21 = scalar_select %p137_p10, %s759_s13, 1  ;;  %vm148_vm0 = vcmask 130048   ;;  %v146_v33 = vld [vmem:[%s877_s1] sm:$0xff]  ;;  %vm296_vm1 = vcmask 261120   ;;  %v147_v54 = vld [vmem:[%s877_s1 + $0x8] sm:$0xff] }
  0x14   : > { %605 = vmatprep.mubr.msk.f32.mxu1 %vm296_vm1, %v146_v33  ;;  %p660_p12 = pnand %p659_p11, %p776_p5  ;;  %s720_s13 = smov [#allocation2]  }
  0x15   : > { %s563_s22 = sshll.u32 %s138_s21, 5  ;;  %s832_s21 = scalar_lea.hbm %s878_s2, %s564_s14 }
  0x16   : > { %s141_s25 = scalar_lea.vmem %s876_s0, %s563_s22  ;;  %s836_s22 = scalar_lea.sflag [#allocation3], %s134_s5 }
  0x17   : > { %v142_v0 = vld [vmem:[%s141_s25] sm:$0xff]  ;;  %v143_v1 = vld [vmem:[%s141_s25 + $0x8] sm:$0xff]  ;;  %v144_v2 = vld [vmem:[%s141_s25 + $0x10] sm:$0xff]  ;;  %p661_p13 = pneg %p660_p12  ;;  %s662_s24 = sshll.u32 %s720_s13, 4  ;;  %s663_s24 = int_to_ptr.vmem [resolvable:$false] %s662_s24 }
  0x18   : > { %v145_v3 = vld [vmem:[%s141_s25 + $0x18] sm:$0xff]  ;;  %v149_v4 = vsel %vm148_vm0, %v142_v0, 0.0  ;;  %v150_v5 = vsel %vm148_vm0, %v143_v1, 0.0  ;;  %v152_v6 = vsel %vm148_vm0, %v144_v2, 0.0  ;;  %s664_s25 = scalar_lea.vmem %s663_s24, 512  ;;  %p665_p0 = scmp.lt.s32.totalorder %s827_s8, %s663_s24 }
  0x19   : > { %v151_v7 = vadd.f32 %v150_v5, %v149_v4  ;;  %v154_v8 = vsel %vm148_vm0, %v145_v3, 0.0  ;;  %p666_p1 = scmp.lt.s32.totalorder %s664_s25, %s658_s23 }
  0x1b   : > { %v153_v9 = vadd.f32 %v152_v6, %v151_v7  ;;  %p667_p2 = por %p666_p1, %p665_p0 }
  0x1d   : > { %v155_v10 = vadd.f32 %v154_v8, %v153_v9  ;;  %p668_p3 = pnand %p667_p2, %p661_p13 }
  0x1f   : > { %v156_v11 = vrot.slane %v155_v10, 4 }
  0x21   : > { %v157_v12 = vadd.f32 %v156_v11, %v155_v10 }
  0x23   : > { %v158_v13 = vrot.slane %v157_v12, 2 }
  0x25   : > { %v159_v14 = vadd.f32 %v158_v13, %v157_v12 }
  0x27   : > { %v160_v15 = vrot.slane %v159_v14, 1 }
  0x29   : > { %v161_v16 = vadd.f32 %v160_v15, %v159_v14 }
  0x2b   : > { %v163_v17 = vmul.f32 0.03125, %v161_v16 }
  0x2d   : > { %v167_v18 = vsub.f32 %v145_v3, %v163_v17  ;;  %v166_v19 = vsub.f32 %v144_v2, %v163_v17  ;;  %v165_v20 = vsub.f32 %v143_v1, %v163_v17  ;;  %v164_v21 = vsub.f32 %v142_v0, %v163_v17 }
  0x2f   : > { %583 = vmatprep.subr.msk.mxu0 %vm148_vm0, %v167_v18  ;;  %v269_v22 = vmul.f32 %v164_v21, %v164_v21  ;;  %v270_v23 = vmul.f32 %v165_v20, %v165_v20  ;;  %v271_v24 = vmul.f32 %v166_v19, %v166_v19  ;;  %v272_v25 = vmul.f32 %v167_v18, %v167_v18 }
  0x30   : > { %584 = vmatpush3.xpose.msk.msra.mxu0 %vm148_vm0, %v167_v18  ;;  %591 = vmatprep.mubr.msk.f32.mxu0 %vm148_vm0, %v164_v21 }
  0x31   : > { %585 = vmatprep.subr.msk.mxu0 %vm148_vm0, %v166_v19  ;;  %v273_v26 = vsel %vm148_vm0, %v269_v22, 0.0  ;;  %v274_v27 = vsel %vm148_vm0, %v270_v23, 0.0  ;;  %v276_v28 = vsel %vm148_vm0, %v271_v24, 0.0  ;;  %v278_v30 = vsel %vm148_vm0, %v272_v25, 0.0 }
  0x32   : > { %v275_v29 = vadd.f32 %v274_v27, %v273_v26 }
  0x34   : > { %586 = vmatpush3.xpose.msk.msra.mxu0 %vm148_vm0, %v166_v19  ;;  %v277_v31 = vadd.f32 %v276_v28, %v275_v29 }
  0x35   : > { %587 = vmatprep.subr.msk.mxu0 %vm148_vm0, %v165_v20 }
  0x36   : > { %v279_v32 = vadd.f32 %v278_v30, %v277_v31 }
  0x38   : > { %588 = vmatpush3.xpose.msk.msra.mxu0 %vm148_vm0, %v165_v20  ;;  %280 = vadd.xlane.f32.xlu0 %v279_v32 }
  0x39   : > { %589 = vmatprep.subr.msk.mxu0 %vm148_vm0, %v164_v21 }
  0x3c   : > { %590 = vmatpush3.xpose.msk.msra.mxu0 %vm148_vm0, %v164_v21 }
  0x3f   : > { %592 = vmatmul.mubr.msk.f32.vlgmr.msra.gmra.mxu0 %vm148_vm0, %v165_v20 }
  0x40   : > { %594 = vmatprep.mubr.msk.f32.mxu0 %vm148_vm0, %v166_v19 }
  0x43   : > { %595 = vmatmul.mubr.msk.f32.gmra.mxu0 %vm148_vm0, %v167_v18 }
  0xc1   : > { %v281_v34 = vpop.xlane.xlu0 %280 }
  0xc2   : > { %v282_v35 = vrot.slane %v281_v34, 4 }
  0xc4   : > { %v283_v36 = vadd.f32 %v282_v35, %v281_v34 }
  0xc6   : > { %v284_v37 = vrot.slane %v283_v36, 2 }
  0xc8   : > { %v285_v38 = vadd.f32 %v284_v37, %v283_v36 }
  0xca   : > { %v286_v39 = vrot.slane %v285_v38, 1 }
  0xcc   : > { %v287_v40 = vadd.f32 %v286_v39, %v285_v38 }
  0xce   : > { %615 = vpush %v287_v40 }
  0xff   : > { %v593_v41 = vpop.f32.mrf.mxu0  ;;  %s616_s28 = spop %615 }
 0x100   : > { %s289_s29 = smul.f32 0.03125, %s616_s28  ;;  %v266_v49 = vmul.f32 0.03125, %v593_v41 }
 0x101   : > { %v246_v42 = vpop.f32.mrf.mxu0 }
 0x102   : > { %s290_s30 = smul.f32 0.01, %s289_s29  ;;  %v265_v50 = vmul.f32 0.03125, %v246_v42 }
 0x103   : > { %v596_v43 = vpop.f32.mrf.mxu0 }
 0x104   : > { %v291_v44 = vstv %s290_s30  ;;  %v268_v45 = vmul.f32 0.03125, %v596_v43 }
 0x105   : > { %v256_v46 = vpop.f32.mrf.mxu0  ;;  %v293_v52 = vadd.f32 %v291_v44, %v266_v49  ;;  %v292_v53 = vadd.f32 %v291_v44, %v265_v50 }
 0x106   : > { %v267_v47 = vmul.f32 0.03125, %v256_v46  ;;  %v295_v48 = vadd.f32 %v291_v44, %v268_v45 }
 0x108   : > { %v294_v51 = vadd.f32 %v291_v44, %v267_v47  ;;  %597 = vmatprep.subr.mxu1 %v295_v48 }
 0x109   : > { %598 = vmatpush3.msra.mxu1 %v295_v48 }
 0x10a   : > { %599 = vmatprep.subr.mxu1 %v294_v51 }
 0x10b   : > { %600 = vmatpush3.msra.mxu1 %v294_v51 }
 0x10c   : > { %601 = vmatprep.subr.mxu1 %v293_v52 }
 0x10d   : > { %602 = vmatpush3.msra.mxu1 %v293_v52 }
 0x10e   : > { %603 = vmatprep.subr.mxu1 %v292_v53 }
 0x10f   : > { %604 = vmatpush3.msra.mxu1 %v292_v53 }
 0x110   : > { %606 = vmatmul.mubr.msk.f32.vlgmr.msra.gmra.mxu1 %vm296_vm1, %v147_v54  ;;  %608 = vmatprep.subr.msk.mxu1 %vm296_vm1, %v147_v54 }
 0x111   : > { %609 = vmatpush3.xpose.msk.msra.mxu1 %vm296_vm1, %v147_v54 }
 0x112   : > { %610 = vmatprep.subr.msk.mxu1 %vm296_vm1, %v146_v33 }
 0x115   : > { %611 = vmatpush3.xpose.msk.msra.mxu1 %vm296_vm1, %v146_v33 }
 0x1d0   : > { %v607_v55 = vpop.f32.mrf.mxu1 }
 0x1d2   : > { %v369_v56 = vpop.f32.mrf.mxu1 }
 0x1d3   : > { %612 = vmatprep.mubr.msk.f32.mxu1 %vm296_vm1, %v369_v56 }
 0x1d4   : > { %613 = vmatmul.mubr.msk.f32.vlgmr.msra.gmra.mxu1 %vm296_vm1, %v607_v55 }
 0x294   : > { %v614_v57 = vpop.f32.mrf.mxu1 }
 0x295   : > { %460 = vst.msk [vmem:[%s136_s7 + $0x8] sm:$0xff] %vm148_vm0, %v614_v57 }
 0x296   : > { %v450_v58 = vpop.f32.mrf.mxu1 }
 0x297   : > { %459 = vst.msk [vmem:[%s136_s7] sm:$0xff] %vm148_vm0, %v450_v58 }
 0x298   : > { %671 = shalt.err (!%p668_p3)
}
 0x299   : > { %s672_s26 = scalar_lea.hbm %s832_s21, 256  ;;  %s676_s29 = scalar_lea.hbm %s878_s2, 512 }
 0x29a   : > { %p673_p4 = scmp.ne.s32.totalorder %s832_s21, %s672_s26  ;;  %p677_p9 = scmp.lt.s32.totalorder %s832_s21, %s878_s2 }
 0x29b   : > { %p678_p10 = scmp.lt.s32.totalorder %s676_s29, %s672_s26 }
 0x29c   : > { %p674_p7 = pnand %p673_p4, %p776_p5 }
 0x29d   : > { %p679_p11 = por %p678_p10, %p677_p9 }
 0x29e   : > { %p675_p8 = pneg %p674_p7 }
 0x2a0   : > { %p680_p12 = pnand %p679_p11, %p675_p8 }
 0x2a2   : > { %683 = shalt.err (!%p680_p12)
}
 0x2a3   : > { %s721_s4 = smov 128   ;;  %s722_s5 = smov 8  }
 0x2a4   : > { %617 = dma.vmem_to_hbm [thread:$0]  (%p776_p5), %s827_s8, 256, %s832_s21, %s836_s22, %s721_s4, %s721_s4, %s722_s5  }
 0x2a5 PF: > { %p623_p13 = scmp.ge.s32.totalorder %s718_s12, 2  ;;  %s490_s6 = sand.u32 1, %s706_s9  }
 0x2a6   : > { %s491_s7 = scalar_lea.sflag [#allocation3], %s490_s6 }
 0x2a7   : > { %p620_p0 = pnand %p623_p13, %p780_p6 }
 0x2a9   : > { %p621_p1 = pneg %p620_p0 }
 0x2ab   : > { %701 = dma.done.wait (%p621_p1), %s491_s7, 256  }
 0x2ac   : > { %703 = vsyncadd (%p621_p1), %s491_s7, 4294967040  ;;  %p12_p2 = scmp.ge.s32.totalorder %s763_s15, 4   ;;  %s881_s9 = smov %s710_s10 }
 0x2ad   : > { %s882_s10 = smov %s714_s11  ;;  %s883_s11 = smov %s774_s18 }
 0x2ae   : > { %s884_s12 = smov %s763_s15  ;;  %14 = sbr.rel (!%p12_p2) target bundleno = 3 (0x3), region = 63 }
 0x2b3   :  { %496 = vsyncpa [#allocation3], 1 }
 0x2b4   :  { %498 = vsyncpa [#allocation3 + $0x1], 1 }

</bundles_post_ra>
